<compile_context>
chip_gen: v5e
topology: v5e:2x2
jax: 0.10.0
libtpu: 0.0.40
codegen_flags: <defaults>
</compile_context>

<pallas_src>
import math

import jax
import jax.numpy as jnp
from jax.experimental import pallas as pl
from jax.experimental.pallas import tpu as pltpu


def _round_up(n, m):
    return ((n + m - 1) // m) * m


def _lane_multiple(c, target):
    # Smallest m such that m * c is a multiple of `target`.
    return target // math.gcd(c, target)


def _vmem_budget_bytes():
    # Per-generation VMEM budget: ~3/4 of physical (48 MiB on v7x's 64 MiB,
    # 96 MiB on v5e/v6e's 128 MiB). Conservative fallback if the query fails.
    cap = 64 * 1024 * 1024
    try:
        info = pltpu.get_tpu_info()
        cap = int(getattr(info, "vmem_capacity_bytes", cap)) or cap
    except Exception:
        pass
    return (cap * 3) // 4


def _choose_block_b(B, S, C, itemsize, vmem_budget):
    # Per-unit-of-block_b VMEM estimate:
    #   x block, double-buffered               : 2 * S * C * itemsize
    #   f32 temporaries (logits/alphas/product): ~3 * S * C * 4
    #   output block, double-buffered          : 2 * C * itemsize
    per_bb = S * C * (2 * itemsize + 12) + 2 * C * itemsize
    fixed = 2 * S * S * itemsize + 2 * S * 4  # resident weight + bias
    max_bb = max(1, (vmem_budget - fixed) // per_bb)
    if max_bb >= B:
        return B  # single block covering the whole batch (no alignment needed)

    # Lane alignment: block_b * C must be a multiple of 128; prefer 256
    # (MXU N on v6e/v7x) when the budget allows it.
    align = _lane_multiple(C, 256)
    if align > max_bb:
        align = _lane_multiple(C, 128)
    block_b = max(align, (max_bb // align) * align)

    # Even number of grid steps when >1 so v7x's two TensorCores split evenly.
    steps = -(-B // block_b)
    if steps > 1 and steps % 2 == 1:
        steps += 1
        block_b = max(align, _round_up(-(-B // steps), align))

    return min(block_b, B)


def _attention_pool_kernel(x_ref, w_ref, b_ref, o_ref):
    # x_ref : (S, TBC)  lane-packed block; column b*C + c holds x[b, :, c]
    # w_ref : (S, S)    linear weight (resident across grid steps)
    # b_ref : (S, 1)    linear bias as a column vector (f32)
    # o_ref : (1, TBC)  pooled output row (lane-dense)
    x = x_ref[...]
    w = w_ref[...]
    bias = b_ref[...]

    # One MXU matmul for the whole block: logits[s, n] = sum_t W[s, t] * x[t, n].
    logits = jnp.dot(w, x, preferred_element_type=jnp.float32)       # (S, TBC) f32
    z = logits + bias                                                 # bias per sublane row

    # sigmoid(z) == 0.5 * tanh(0.5 * z) + 0.5  -> single EUP transcendental.
    alphas = 0.5 * jnp.tanh(0.5 * z) + 0.5                            # (S, TBC) f32

    # Per-lane (per (b, c)) sublane reductions over S; x promotes to f32 in-flight.
    num = jnp.sum(x * alphas, axis=0, keepdims=True)                  # (1, TBC) f32
    den = jnp.sum(alphas, axis=0, keepdims=True)                      # (1, TBC) f32, > 0

    # Exact reciprocal (approx=True would relax accuracy below the 1e-5 check).
    o_ref[...] = (num * pl.reciprocal(den, approx=False)).astype(o_ref.dtype)


def attention_pool(x, weight, bias, *, block_b=None):
    """x: (B, S, C), weight: (S, S), bias: (S,) -> out: (B, C)."""
    B, S, C = x.shape
    itemsize = jnp.dtype(x.dtype).itemsize

    vmem_budget = _vmem_budget_bytes()
    if block_b is None:
        block_b = _choose_block_b(B, S, C, itemsize, vmem_budget)
    elif block_b < B:
        align = _lane_multiple(C, 128)
        block_b = min(max(align, (block_b // align) * align), B)
    else:
        block_b = B

    # Lane-packed view of x: (S, B*C). Costs one extra HBM pass if XLA cannot
    # fuse the relayout into the producer; on strictly HBM-bound v5e cases the
    # (B, S, C) layout may be preferable.
    # TODO(synk): fuse this relayout into the upstream producer of x.
    x2d = jnp.transpose(x, (1, 0, 2)).reshape(S, B * C)

    # Weight stays in the input dtype (bf16 inputs -> bf16 MXU operands);
    # accumulation is f32 inside the kernel. Bias stays f32.
    w = weight.astype(x.dtype)
    bias_col = bias.reshape(S, 1).astype(jnp.float32)

    tbc = block_b * C
    grid = pl.cdiv(B, block_b)  # ragged last block; OOB lanes masked on write

    cost = pl.CostEstimate(
        flops=2 * B * S * S * C + 4 * B * S * C,
        transcendentals=B * S * C,                 # one tanh per element
        bytes_accessed=(B * S * C * itemsize       # x
                        + S * S * itemsize         # weight
                        + S * 4                    # bias
                        + B * C * itemsize),       # output
    )

    # NOTE: weight/bias have constant index_maps (DMA'd once); marking them
    # pipeline_mode=pl.Buffered(1) would halve their resident VMEM, and for
    # very large S the (S, S) weight should be K-tiled over an "arbitrary"
    # grid axis with an f32 accumulator (threshold ~half the S on v7x).
    out2d = pl.pallas_call(
        _attention_pool_kernel,
        out_shape=jax.ShapeDtypeStruct((1, B * C), x.dtype),
        grid_spec=pltpu.PrefetchScalarGridSpec(
            num_scalar_prefetch=0,
            grid=(grid,),
            in_specs=[
                pl.BlockSpec((S, tbc), lambda b: (0, b)),   # x (lane-packed)
                pl.BlockSpec((S, S), lambda b: (0, 0)),     # weight (resident)
                pl.BlockSpec((S, 1), lambda b: (0, 0)),     # bias (resident)
            ],
            out_specs=pl.BlockSpec((1, tbc), lambda b: (0, b)),
        ),
        compiler_params=pltpu.CompilerParams(
            dimension_semantics=("parallel",),
            vmem_limit_bytes=int(vmem_budget),
        ),
        cost_estimate=cost,
    )(x2d, w, bias_col)

    return out2d.reshape(B, C)   # free: row-major (b, c) order matches lanes


def reference_attention_pool(x, weight, bias):
    # Pure-JAX reference mirroring the PyTorch forward.
    x_perm = jnp.transpose(x, (0, 2, 1))                 # (B, C, S)
    alphas = jax.nn.sigmoid(x_perm @ weight.T + bias)    # (B, C, S)
    alphas = jnp.transpose(alphas, (0, 2, 1))            # (B, S, C)
    return jnp.sum(x * alphas, axis=1) / jnp.sum(alphas, axis=1)


if __name__ == "__main__":
    B, S, C = 16, 8, 32   # batch, seq_len, channels

    key = jax.random.PRNGKey(0)
    kx, kw, kb = jax.random.split(key, 3)

    x = jax.random.normal(kx, (B, S, C), dtype=jnp.float32)

    # Deterministic nn.Linear-style init: U(-1/sqrt(S), 1/sqrt(S))
    bound = 1.0 / (S ** 0.5)
    weight = jax.random.uniform(kw, (S, S), minval=-bound, maxval=bound,
                                dtype=jnp.float32)
    bias = jax.random.uniform(kb, (S,), minval=-bound, maxval=bound,
                              dtype=jnp.float32)

    out = attention_pool(x, weight, bias)
    out = jax.block_until_ready(out)

    ref = reference_attention_pool(x, weight, bias)
    assert out.shape == (B, C)
    assert jnp.allclose(out, ref, atol=1e-5, rtol=1e-5)

    print("KERNEL_OK")
</pallas_src>

<mosaic_0001>
module attributes {stable_mosaic.version = 11 : i64} {
  func.func @_attention_pool_kernel(%arg0: i32, %arg1: memref<8x512xf32, #tpu.memory_space<vmem>>, %arg2: memref<8x8xf32, #tpu.memory_space<vmem>>, %arg3: memref<8x1xf32, #tpu.memory_space<vmem>>, %arg4: memref<1x512xf32, #tpu.memory_space<vmem>>) attributes {dimension_semantics = [#tpu.dimension_semantics<parallel>], iteration_bounds = array<i64: 1>, scalar_prefetch = 0 : i64, scratch_operands = 0 : i64, tpu.core_type = #tpu.core_type<tc>, window_params = [{transform_indices = @transform_0, window_bounds = array<i64: 8, 512>}, {pipeline_mode = #tpu.pipeline_mode<synchronous>, transform_indices = @transform_1, window_bounds = array<i64: 8, 8>}, {pipeline_mode = #tpu.pipeline_mode<synchronous>, transform_indices = @transform_2, window_bounds = array<i64: 8, 1>}, {transform_indices = @transform_3, window_bounds = array<i64: 1, 512>}]} {
    %c0 = arith.constant 0 : index
    %c0_0 = arith.constant 0 : index
    %0 = vector.load %arg1[%c0, %c0_0] : memref<8x512xf32, #tpu.memory_space<vmem>>, vector<8x512xf32>
    %c0_1 = arith.constant 0 : index
    %c0_2 = arith.constant 0 : index
    %1 = vector.load %arg2[%c0_1, %c0_2] : memref<8x8xf32, #tpu.memory_space<vmem>>, vector<8x8xf32>
    %c0_3 = arith.constant 0 : index
    %c0_4 = arith.constant 0 : index
    %2 = vector.load %arg3[%c0_3, %c0_4] : memref<8x1xf32, #tpu.memory_space<vmem>>, vector<8x1xf32>
    %cst = arith.constant dense<0.000000e+00> : vector<8x512xf32>
    %3 = tpu.matmul %1, %0, %cst {dimension_numbers = #tpu.dot_dimension_numbers<[1], [0], [0], [1], [0, 0, 1, 1], [], []>} : vector<8x8xf32>, vector<8x512xf32>, vector<8x512xf32> -> vector<8x512xf32>
    %4 = vector.broadcast %2 : vector<8x1xf32> to vector<8x512xf32>
    %5 = arith.addf %3, %4 : vector<8x512xf32>
    %cst_5 = arith.constant 5.000000e-01 : f32
    %6 = vector.broadcast %cst_5 : f32 to vector<8x512xf32>
    %7 = arith.mulf %6, %5 : vector<8x512xf32>
    %8 = math.tanh %7 : vector<8x512xf32>
    %cst_6 = arith.constant 5.000000e-01 : f32
    %9 = vector.broadcast %cst_6 : f32 to vector<8x512xf32>
    %10 = arith.mulf %9, %8 : vector<8x512xf32>
    %cst_7 = arith.constant 5.000000e-01 : f32
    %11 = vector.broadcast %cst_7 : f32 to vector<8x512xf32>
    %12 = arith.addf %10, %11 : vector<8x512xf32>
    %13 = arith.mulf %0, %12 : vector<8x512xf32>
    %cst_8 = arith.constant dense<0.000000e+00> : vector<512xf32>
    %14 = vector.multi_reduction <add>, %13, %cst_8 [0] : vector<8x512xf32> to vector<512xf32>
    %15 = vector.shape_cast %14 : vector<512xf32> to vector<1x512xf32>
    %cst_9 = arith.constant dense<0.000000e+00> : vector<512xf32>
    %16 = vector.multi_reduction <add>, %12, %cst_9 [0] : vector<8x512xf32> to vector<512xf32>
    %17 = vector.shape_cast %16 : vector<512xf32> to vector<1x512xf32>
    %18 = tpu.reciprocal %17 : vector<1x512xf32> -> vector<1x512xf32>
    %19 = arith.mulf %15, %18 : vector<1x512xf32>
    %c0_10 = arith.constant 0 : index
    %c0_11 = arith.constant 0 : index
    %20 = vector.load %arg4[%c0_10, %c0_11] : memref<1x512xf32, #tpu.memory_space<vmem>>, vector<1x512xf32>
    tpu.vector_store %arg4[%c0_10, %c0_11], %19 {strides = array<i32>} : memref<1x512xf32, #tpu.memory_space<vmem>>, vector<1x512xf32>,
    return
  }
  func.func @transform_0(%arg0: i32) -> (i32, i32) {
    %c0_i32 = arith.constant 0 : i32
    %c0_i32_0 = arith.constant 0 : i32
    return %c0_i32, %arg0 : i32, i32
  }
  func.func @transform_1(%arg0: i32) -> (i32, i32) {
    %c0_i32 = arith.constant 0 : i32
    %c0_i32_0 = arith.constant 0 : i32
    %c0_i32_1 = arith.constant 0 : i32
    return %c0_i32, %c0_i32_0 : i32, i32
  }
  func.func @transform_2(%arg0: i32) -> (i32, i32) {
    %c0_i32 = arith.constant 0 : i32
    %c0_i32_0 = arith.constant 0 : i32
    %c0_i32_1 = arith.constant 0 : i32
    return %c0_i32, %c0_i32_0 : i32, i32
  }
  func.func @transform_3(%arg0: i32) -> (i32, i32) {
    %c0_i32 = arith.constant 0 : i32
    %c0_i32_0 = arith.constant 0 : i32
    return %c0_i32, %arg0 : i32, i32
  }
}

</mosaic_0001>

<bundles_post_ra>
// kernel: tpu_custom_call.1
= control target key start
LH: loop header
LB: loop body
LE: loop exit
PB: predicated region body
PF: predicated region fallthrough
CT: control target
= control target key end

     0   :  { %8 = vsyncpa [#allocation3], 0  ;;  %s449_s0 = inlined_call_operand.hbm [shape: f32[8,512], index: 0, kind: input, shape index: {}]   ;;  %s450_s1 = inlined_call_operand.vmem [shape: f32[8,8], index: 1, kind: input, shape index: {}]   ;;  %s451_s2 = inlined_call_operand.vmem [shape: f32[8,1], index: 2, kind: input, shape index: {}]   ;;  %s452_s3 = inlined_call_operand.hbm [shape: f32[1,512], index: 3, kind: output, shape index: {}]  }
   0x1   :  { %9 = vsyncpa [#allocation4], 0  ;;  %s15_s14 = sshll.u32 %s449_s0, 4  ;;  %s364_s15 = smov [#allocation2]   ;;  %s16_s14 = int_to_ptr.hbm [resolvable:$true] %s15_s14 }
   0x2   :  { %s17_s16 = sshll.u32 %s364_s15, 4  ;;  %s18_s16 = int_to_ptr.vmem [resolvable:$true] %s17_s16 }
   0x3   :  { %20 = dma.hbm_to_vmem [thread:$0]  %s16_s14, 512, %s18_s16, [#allocation3]  }
   0x4   :  { %360 = dma.done.wait [#allocation3], 512  }
   0x5   :  { %361 = vsyncadd [#allocation3], 4294966784  ;;  %v365_v0 = vmov 0   ;;  %v29_v1 = vld [vmem:[#allocation2] sm:$0xff]  ;;  %v30_v2 = vld [vmem:[#allocation2 + $0x8] sm:$0xff]  ;;  %vm40_vm0 = vcmask 64512  }
   0x6   :  { %295 = vset.pattern.permute.xlu0 %v365_v0  ;;  %v31_v3 = vld [vmem:[#allocation2 + $0x10] sm:$0xff]  ;;  %59 = vmatpush.msra.mxu0 %v29_v1  ;;  %v32_v4 = vld [vmem:[#allocation2 + $0x18] sm:$0xff]  ;;  %v33_v5 = vld [vmem:[%s450_s1] sm:$0xff]  ;;  %s366_s1 = smov [#allocation5]   ;;  %s278_s22 = sshll.u32 %s452_s3, 4  ;;  %s279_s22 = int_to_ptr.hbm [resolvable:$true] %s278_s22 }
   0x7   :  { %79 = vmatpush.msra.mxu1 %v30_v2  ;;  %99 = vmatpush.msra.mxu2 %v31_v3  ;;  %v34_v6 = vld [vmem:[%s451_s2] sm:$0xff]  ;;  %s276_s2 = sshll.u32 %s366_s1, 4  ;;  %s277_s2 = int_to_ptr.vmem [resolvable:$true] %s276_s2 }
   0x8   :  { %119 = vmatpush.msra.mxu3 %v32_v4  ;;  %288 = vmatmul.msk.f32.vlgmr.msra.gmra.mxu0 %vm40_vm0, %v33_v5 }
   0x9   :  { %289 = vmatmul.msk.f32.vlgmr.msra.gmra.mxu1 %vm40_vm0, %v33_v5  ;;  %290 = vmatmul.msk.f32.vlgmr.msra.gmra.mxu2 %vm40_vm0, %v33_v5 }
   0xa   :  { %291 = vmatmul.msk.f32.vlgmr.msra.gmra.mxu3 %vm40_vm0, %v33_v5  ;;  %37 = vperm.xlu0 %295, %v34_v6  }
  0x7c   :  { %v38_v7 = vpop.permute.xlu0 %37 }
  0x85   :  { %v61_v8 = vpop.f32.mrf.mxu0 }
  0x86   :  { %v81_v9 = vpop.f32.mrf.mxu1  ;;  %v62_v10 = vadd.f32 %v61_v8, %v38_v7 }
  0x87   :  { %v82_v11 = vadd.f32 %v81_v9, %v38_v7 }
  0x88   :  { %v124_v12 = vmul.f32 0.5, %v62_v10 }
  0x89   :  { %v125_v13 = vmul.f32 0.5, %v82_v11 }
  0x8a   :  { %296 = vtanh.f32 %v124_v12 }
  0x8b   :  { %298 = vtanh.f32 %v125_v13 }
  0x8c   :  { %v101_v14 = vpop.f32.mrf.mxu2 }
  0x8d   :  { %v121_v15 = vpop.f32.mrf.mxu3  ;;  %v102_v16 = vadd.f32 %v101_v14, %v38_v7 }
  0x8e   :  { %v122_v17 = vadd.f32 %v121_v15, %v38_v7 }
  0x8f   :  { %v126_v18 = vmul.f32 0.5, %v102_v16 }
  0x90   :  { %v127_v19 = vmul.f32 0.5, %v122_v17  ;;  %v297_v20 = vpop.eup %296 }
  0x91   :  { %v299_v21 = vpop.eup %298  ;;  %v132_v22 = vmul.f32 0.5, %v297_v20  ;;  %300 = vtanh.f32 %v126_v18 }
  0x92   :  { %v133_v23 = vmul.f32 0.5, %v299_v21  ;;  %302 = vtanh.f32 %v127_v19 }
  0x93   :  { %v136_v24 = vadd.f32 0.5, %v132_v22 }
  0x94   :  { %v137_v25 = vadd.f32 0.5, %v133_v23 }
  0x95   :  { %v168_v26 = vrot.slane %v136_v24, 4  ;;  %v140_v34 = vmul.f32 %v136_v24, %v29_v1 }
  0x96   :  { %v141_v27 = vmul.f32 %v137_v25, %v30_v2  ;;  %v174_v28 = vrot.slane %v137_v25, 4 }
  0x97   :  { %v301_v29 = vpop.eup %300  ;;  %v169_v30 = vadd.f32 %v168_v26, %v136_v24  ;;  %v144_v45 = vrot.slane %v140_v34, 4 }
  0x98   :  { %v303_v31 = vpop.eup %302  ;;  %v175_v32 = vadd.f32 %v174_v28, %v137_v25  ;;  %v134_v33 = vmul.f32 0.5, %v301_v29  ;;  %v150_v37 = vrot.slane %v141_v27, 4 }
  0x99   :  { %v170_v35 = vrot.slane %v169_v30, 2  ;;  %v135_v36 = vmul.f32 0.5, %v303_v31  ;;  %v145_v57 = vadd.f32 %v144_v45, %v140_v34 }
  0x9a   :  { %v176_v38 = vrot.slane %v175_v32, 2  ;;  %v138_v39 = vadd.f32 0.5, %v134_v33  ;;  %v151_v48 = vadd.f32 %v150_v37, %v141_v27 }
  0x9b   :  { %v171_v40 = vadd.f32 %v170_v35, %v169_v30  ;;  %v139_v41 = vadd.f32 0.5, %v135_v36  ;;  %v146_v1 = vrot.slane %v145_v57, 2 }
  0x9c   :  { %v177_v42 = vadd.f32 %v176_v38, %v175_v32  ;;  %v142_v43 = vmul.f32 %v138_v39, %v31_v3  ;;  %v180_v44 = vrot.slane %v138_v39, 4  ;;  %v152_v59 = vrot.slane %v151_v48, 2 }
  0x9d   :  { %v172_v46 = vrot.slane %v171_v40, 1  ;;  %v186_v47 = vrot.slane %v139_v41, 4  ;;  %v143_v52 = vmul.f32 %v139_v41, %v32_v4  ;;  %v408_v11 = vadd.f32 %v146_v1, %v145_v57 }
  0x9e   :  { %v178_v49 = vrot.slane %v177_v42, 1  ;;  %v181_v50 = vadd.f32 %v180_v44, %v138_v39  ;;  %v156_v55 = vrot.slane %v142_v43, 4  ;;  %v153_v3 = vadd.f32 %v152_v59, %v151_v48 }
  0x9f   :  { %v396_v51 = vadd.f32 %v172_v46, %v171_v40  ;;  %v187_v53 = vadd.f32 %v186_v47, %v139_v41  ;;  %v162_v61 = vrot.slane %v143_v52, 4  ;;  %v148_v20 = vrot.slane %v408_v11, 1 }
  0xa0   :  { %v179_v54 = vadd.f32 %v178_v49, %v177_v42  ;;  %v182_v56 = vrot.slane %v181_v50, 2  ;;  %v157_v63 = vadd.f32 %v156_v55, %v142_v43  ;;  %v154_v13 = vrot.slane %v153_v3, 1 }
  0xa1   :  { %304 = vrcp.f32 %v396_v51  ;;  %v188_v58 = vrot.slane %v187_v53, 2  ;;  %v163_v6 = vadd.f32 %v162_v61, %v143_v52  ;;  %v201_v18 = vand.u32 2147483647, %v396_v51 }
  0xa2   :  { %306 = vrcp.f32 %v179_v54  ;;  %v183_v60 = vadd.f32 %v182_v56, %v181_v50  ;;  %v158_v9 = vrot.slane %v157_v63, 2  ;;  %v215_v19 = vand.u32 2147483647, %v179_v54 }
  0xa3   :  { %v189_v62 = vadd.f32 %v188_v58, %v187_v53  ;;  %v164_v15 = vrot.slane %v163_v6, 2  ;;  %v217_v22 = vand.u32 2147483648, %v179_v54  ;;  %v155_v24 = vadd.f32 %v154_v13, %v153_v3 }
  0xa4   :  { %v184_v0 = vrot.slane %v183_v60, 1  ;;  %v159_v17 = vadd.f32 %v158_v9, %v157_v63  ;;  %vm197_vm2 = vweird.f32 %v396_v51  ;;  %v203_v26 = vand.u32 2147483648, %v396_v51 }
  0xa5   :  { %v190_v2 = vrot.slane %v189_v62, 1  ;;  %v165_v29 = vadd.f32 %v164_v15, %v163_v6  ;;  %vm211_vm3 = vweird.f32 %v179_v54  ;;  %vm418_vm4 = vcmp.eq.f32.partialorder %v201_v18, 8.507059e+37 }
  0xa6   :  { %v399_v5 = vadd.f32 %v184_v0, %v183_v60  ;;  %v160_v31 = vrot.slane %v159_v17, 1  ;;  %vm216_vm6 = vcmp.eq.f32.partialorder %v215_v19, 8.507059e+37  ;;  %v218_v35 = vor.u32 1.1754944e-38, %v217_v22 }
  0xa7   :  { %v401_v4 = vpop.eup %304  ;;  %v403_v7 = vadd.f32 %v190_v2, %v189_v62  ;;  %v166_v44 = vrot.slane %v165_v29, 1  ;;  %v204_v48 = vor.u32 1.1754944e-38, %v203_v26  ;;  %v266_v63 = vlaneseq }
  0xa8   :  { %v307_v8 = vpop.eup %306  ;;  %308 = vrcp.f32 %v399_v5  ;;  %v193_v10 = vmul.f32 %v401_v4, %v396_v51  ;;  %vm198_vm7 = vweird.f32 %v401_v4  ;;  %v229_v38 = vand.u32 2147483647, %v399_v5 }
  0xa9   :  { %v207_v12 = vmul.f32 %v307_v8, %v179_v54  ;;  %310 = vrcp.f32 %v403_v7  ;;  %vm212_vm1 = vweird.f32 %v307_v8  ;;  %v231_v39 = vand.u32 2147483648, %v399_v5  ;;  %vm433_vm10 = vmor %vm197_vm2, %vm198_vm7 }
  0xaa   :  { %v194_v14 = vsub.f32 1.0, %v193_v10  ;;  %vm213_vm5 = vmor %vm211_vm3, %vm212_vm1  ;;  %v245_v43 = vand.u32 2147483648, %v403_v7  ;;  %v243_v46 = vand.u32 2147483647, %v403_v7  ;;  %vm225_vm11 = vweird.f32 %v399_v5 }
  0xab   :  { %v208_v16 = vsub.f32 1.0, %v207_v12  ;;  %vm239_vm12 = vweird.f32 %v403_v7  ;;  %v232_v52 = vor.u32 1.1754944e-38, %v231_v39  ;;  %v161_v55 = vadd.f32 %v160_v31, %v159_v17 }
  0xac   :  { %v195_v25 = vmul.f32 %v401_v4, %v194_v14  ;;  %vm230_vm14 = vcmp.eq.f32.partialorder %v229_v38, 8.507059e+37  ;;  %v246_v56 = vor.u32 1.1754944e-38, %v245_v43  ;;  %v167_v57 = vadd.f32 %v166_v44, %v165_v29 }
  0xad   :  { %v209_v21 = vmul.f32 %v307_v8, %v208_v16  ;;  %vm244_vm0 = vcmp.eq.f32.partialorder %v243_v46, 8.507059e+37  ;;  %v149_v0 = vadd.f32 %v148_v20, %v408_v11  ;;  %vm259_vm1 = vcmask 1040384  }
  0xae   :  { %v309_v23 = vpop.eup %308  ;;  %v196_v37 = vadd.f32 %v401_v4, %v195_v25  ;;  %vm261_vm2 = vcmask 1042434   ;;  %vm263_vm3 = vcmask 1041408  }
  0xaf   :  { %v311_v27 = vpop.eup %310  ;;  %v221_v28 = vmul.f32 %v309_v23, %v399_v5  ;;  %v210_v30 = vadd.f32 %v307_v8, %v209_v21  ;;  %vm226_vm8 = vweird.f32 %v309_v23 }
  0xb0   :  { %v235_v32 = vmul.f32 %v311_v27, %v403_v7  ;;  %vm240_vm9 = vweird.f32 %v311_v27  ;;  %v200_v50 = vsel %vm433_vm10, %v401_v4, %v196_v37  ;;  %vm227_vm13 = vmor %vm225_vm11, %vm226_vm8 }
  0xb1   :  { %v214_v34 = vsel %vm213_vm5, %v307_v8, %v210_v30  ;;  %v222_v36 = vsub.f32 1.0, %v221_v28  ;;  %vm241_vm15 = vmor %vm239_vm12, %vm240_vm9  ;;  %v205_v60 = vsel %vm418_vm4, %v204_v48, %v200_v50  ;;  %vm268_vm4 = vcmp.lt.s32.totalorder %v266_v63, 512 }
  0xb2   :  { %v236_v40 = vsub.f32 1.0, %v235_v32  ;;  %v219_v41 = vsel %vm216_vm6, %v218_v35, %v214_v34  ;;  %v248_v5 = vmul.f32 %v205_v60, %v149_v0 }
  0xb3   :  { %v223_v42 = vmul.f32 %v309_v23, %v222_v36  ;;  %v249_v54 = vmul.f32 %v219_v41, %v155_v24 }
  0xb4   :  { %v237_v45 = vmul.f32 %v311_v27, %v236_v40 }
  0xb5   :  { %v224_v49 = vadd.f32 %v309_v23, %v223_v42  ;;  %v256_v2 = vrot.slane %v249_v54, 7 }
  0xb6   :  { %v238_v53 = vadd.f32 %v311_v27, %v237_v45 }
  0xb7   :  { %v228_v51 = vsel %vm227_vm13, %v309_v23, %v224_v49  ;;  %v260_v6 = vsel %vm259_vm1, %v248_v5, %v256_v2 }
  0xb8   :  { %v233_v58 = vsel %vm230_vm14, %v232_v52, %v228_v51  ;;  %v242_v59 = vsel %vm241_vm15, %v311_v27, %v238_v53 }
  0xb9   :  { %v247_v61 = vsel %vm244_vm0, %v246_v56, %v242_v59  ;;  %v250_v62 = vmul.f32 %v233_v58, %v161_v55 }
  0xba   :  { %v251_v1 = vmul.f32 %v247_v61, %v167_v57 }
  0xbb   :  { %v257_v3 = vrot.slane %v250_v62, 6 }
  0xbc   :  { %v258_v4 = vrot.slane %v251_v1, 5 }
  0xbe   :  { %v262_v7 = vsel %vm261_vm2, %v257_v3, %v258_v4 }
  0xbf   :  { %v264_v8 = vsel %vm263_vm3, %v260_v6, %v262_v7 }
  0xc0   :  { %270 = vst.msk [vmem:[#allocation5] sm:$0xf] %vm268_vm4, %v264_v8 }
  0xc1   :  { %281 = dma.vmem_to_hbm [thread:$0]  %s277_s2, 64, %s279_s22, [#allocation4]  }
  0xc2   :  { %362 = dma.done.wait [#allocation4], 64  }
  0xc3   :  { %363 = vsyncadd [#allocation4], 4294967232 }
  0xc4   :  { %286 = vsyncpa [#allocation3], 1 }
  0xc5   :  { %287 = vsyncpa [#allocation4], 1 }

</bundles_post_ra>
